<compile_context>
chip_gen: v7x
topology: tpu7x:2x2x1
jax: 0.10.0
libtpu: 0.0.40
codegen_flags: <defaults>
</compile_context>

<pallas_src>
import functools

import jax
import jax.numpy as jnp
from jax import lax
from jax.experimental import pallas as pl
from jax.experimental.pallas import tpu as pltpu


def _class_terms(xs, tc, cls, softmax):
    """xs: (C, r, 128) f32 scores, tc: (r, 128) int32 labels, cls: (C, r, 128) int32 iota.

    Returns the three per-pixel dice terms, each (C, r, 128) f32:
      score*onehot (intersect), score*score (z_sum), onehot (y_sum).
    """
    if softmax:
        m = jnp.max(xs, axis=0, keepdims=True)       # elementwise max across C slabs (VPU)
        e = jnp.exp(xs - m)                          # EUP
        s = jnp.sum(e, axis=0, keepdims=True)        # elementwise add across C slabs (VPU)
        p = e * pl.reciprocal(s, approx=True)        # EUP vrcp — off the VPU critical path
    else:
        p = xs
    onehot = (cls == tc[None, :, :]).astype(jnp.float32)
    return p * onehot, p * p, onehot


def _fold8(v):
    """(C, CH, 128) -> (C, 8, 128) by summing 8-row groups (pure cross-vreg VPU adds)."""
    c, ch, _ = v.shape
    if ch == 8:
        return v
    return v.reshape(c, ch // 8, 8, 128).sum(axis=1)


def _dice_partials_kernel(x_ref, t_ref, out_ref, *, softmax, unroll=4):
    """Grid = (S, N, J).

    Per step: consume a (1, C, TPr, 128) score block + (1, 1, TPr, 128) label block and
    accumulate sublane+lane-dense per-class partials into the resident (1, 3, C, 8, 128)
    output block:
        out[0, 0] -> intersect partials (sum of score * onehot)
        out[0, 1] -> z_sum partials     (sum of score^2)
        out[0, 2] -> y_sum partials     (sum of onehot)
    The only cross-lane reduction is done by the caller in plain JAX.
    """
    j = pl.program_id(2)

    @pl.when(j == 0)
    def _():
        out_ref[...] = jnp.zeros_like(out_ref)

    C = x_ref.shape[1]
    TPr = x_ref.shape[2]
    # Chunk rows = one native score tile's sublane extent (8 for f32, 16 for bf16) so every
    # in-kernel slice is tile aligned (no packed-sublane shuffles).
    CH = max(8, 32 // x_ref.dtype.itemsize)
    n_chunks = TPr // CH
    rem = TPr % CH

    if n_chunks > 0:
        cls_c = lax.broadcasted_iota(jnp.int32, (C, CH, 128), 0)   # hoisted, reused

        def chunk_step(r, accs):
            acc_i, acc_z, acc_y = accs
            if isinstance(r, int):
                base = r * CH
            else:
                base = pl.multiple_of(r * CH, CH)
            xs = x_ref[0, :, pl.ds(base, CH), :].astype(jnp.float32)   # (C, CH, 128)
            tc = t_ref[0, 0, pl.ds(base, CH), :].astype(jnp.int32)     # (CH, 128)
            ci, cz, cy = _class_terms(xs, tc, cls_c, softmax)
            return (acc_i + _fold8(ci), acc_z + _fold8(cz), acc_y + _fold8(cy))

        zeros = jnp.zeros((C, 8, 128), jnp.float32)
        accs = (zeros, zeros, zeros)

        n_major = n_chunks // unroll
        if n_major > 0:
            def major_body(rr, accs):
                # Manual unroll: the scheduler sees `unroll` chunk bodies per iteration
                # without unrolling the whole (possibly long) pixel loop.
                for u in range(unroll):
                    accs = chunk_step(rr * unroll + u, accs)
                return accs
            accs = lax.fori_loop(0, n_major, major_body, accs)
        for r in range(n_major * unroll, n_chunks):     # static leftover chunks (< unroll)
            accs = chunk_step(r, accs)

        acc_i, acc_z, acc_y = accs
        out_ref[0, 0] += acc_i
        out_ref[0, 1] += acc_z
        out_ref[0, 2] += acc_y

    if rem:
        # Tail rows (< CH): only hit when a single block spans a small / oddly sized row
        # dimension (e.g. the tiny demo shape, R = 2).
        lo = n_chunks * CH
        xs = x_ref[0, :, lo:lo + rem, :].astype(jnp.float32)
        tc = t_ref[0, 0, lo:lo + rem, :].astype(jnp.int32)
        cls_r = lax.broadcasted_iota(jnp.int32, (C, rem, 128), 0)
        ci, cz, cy = _class_terms(xs, tc, cls_r, softmax)
        for g in range(0, rem, 8):
            rr = min(8, rem - g)
            out_ref[0, 0, :, 0:rr, :] += ci[:, g:g + rr, :]
            out_ref[0, 1, :, 0:rr, :] += cz[:, g:g + rr, :]
            out_ref[0, 2, :, 0:rr, :] += cy[:, g:g + rr, :]


def _pick_tile_rows(rows, c, x_itemsize, t_itemsize, chunk_rows, max_rows, budget):
    """Largest row tile TPr (1 row = 128 pixels) such that the double-buffered score +
    label blocks stay under `budget` bytes, TPr is a multiple of chunk_rows (or spans the
    whole row dimension), and TPr divides `rows`."""
    bytes_per_row = 2 * (c * 128 * x_itemsize) + 2 * (128 * t_itemsize)
    cap = min(max_rows, budget // bytes_per_row, rows)
    if rows <= chunk_rows or cap < chunk_rows:
        return rows
    cap = (cap // chunk_rows) * chunk_rows
    for t in range(cap, chunk_rows - 1, -chunk_rows):
        if rows % t == 0:
            return t
    # rows has no suitable divisor <= cap: fall back to one block spanning the full row
    # dimension (the in-kernel tail path handles the leftover rows).
    return rows


def dice_loss(inputs, target, n_classes, weight=None, softmax=False,
              max_tile_rows=2048, vmem_tile_budget=12 * 1024 * 1024):
    """Matches DiceLoss(n_classes).forward(inputs, target, weight, softmax).

    inputs: (N, C, H, W) float scores/logits (f32 or bf16), target: (N, H, W) int labels.
    Returns a scalar: mean over classes of weighted per-class dice losses.
    """
    N, C, H, W = inputs.shape
    assert C == n_classes, "predict & target shape do not match"
    HW = H * W
    assert HW % 128 == 0, "H*W must be a multiple of 128"
    R = HW // 128

    # Free reshapes only — no transpose, no dtype up-cast of the scores, no wrapper softmax.
    x = inputs.reshape(N, C, R, 128)
    t = target.reshape(N, 1, R, 128)
    if t.dtype != jnp.int32:
        # TODO(synk): stream sub-32-bit integer labels natively (saves 20-30% of HBM bytes
        # at small C); needs chunk rows matched to the packed (16/32, 128) label tiling.
        t = t.astype(jnp.int32)

    chunk_rows = max(8, 32 // x.dtype.itemsize)
    TPr = _pick_tile_rows(R, C, x.dtype.itemsize, t.dtype.itemsize,
                          chunk_rows, max_tile_rows, vmem_tile_budget)
    steps = R // TPr
    # Pixel-axis core split: keeps both v7x TensorCores busy when the batch axis can't
    # (N == 1).  A harmless extra sequential grid axis on single-core v5e/v6e.
    S = 2 if (N == 1 and steps >= 2 and steps % 2 == 0) else 1
    J = steps // S

    kernel = functools.partial(_dice_partials_kernel, softmax=softmax)

    partials = pl.pallas_call(
        kernel,
        out_shape=jax.ShapeDtypeStruct((S * N, 3, C, 8, 128), jnp.float32),
        grid=(S, N, J),
        in_specs=[
            pl.BlockSpec((1, C, TPr, 128), lambda s, n, j: (n, 0, s * J + j, 0)),  # scores
            pl.BlockSpec((1, 1, TPr, 128), lambda s, n, j: (n, 0, s * J + j, 0)),  # labels
        ],
        # Per-(split, n) resident accumulator block, revisited across the pixel axis j.
        out_specs=pl.BlockSpec((1, 3, C, 8, 128),
                               lambda s, n, j: (s * N + n, 0, 0, 0, 0)),
        compiler_params=pltpu.CompilerParams(
            dimension_semantics=("parallel", "parallel", "arbitrary"),
            vmem_limit_bytes=32 * 1024 * 1024,
        ),
    )(x, t)

    # Tiny O(C) epilogue in plain JAX: the single cross-lane reduction + dice formula.
    sums = jnp.sum(partials, axis=(0, 3, 4))                  # (3, C)
    intersect, z_sum, y_sum = sums[0], sums[1], sums[2]
    smooth = 1e-05
    dice = 1.0 - (2.0 * intersect + smooth) / (z_sum + y_sum + smooth)   # (C,)
    if weight is None:
        w = jnp.ones((n_classes,), jnp.float32)
    else:
        w = jnp.asarray(weight, jnp.float32)
        assert w.shape == (n_classes,), "weight length must equal n_classes"
    return jnp.sum(dice * w) / n_classes


def _dice_loss_ref(inputs, target, n_classes, weight=None, softmax=False):
    """Pure-JAX reference mirroring the PyTorch module."""
    if softmax:
        inputs = jax.nn.softmax(inputs, axis=1)
    onehot = jnp.stack(
        [(target == i).astype(jnp.float32) for i in range(n_classes)], axis=1
    )
    if weight is None:
        weight = [1.0] * n_classes
    smooth = 1e-05
    loss = 0.0
    for i in range(n_classes):
        score = inputs[:, i].astype(jnp.float32)
        tgt = onehot[:, i]
        intersect = jnp.sum(score * tgt)
        y_sum = jnp.sum(tgt * tgt)
        z_sum = jnp.sum(score * score)
        dice = 1.0 - (2.0 * intersect + smooth) / (z_sum + y_sum + smooth)
        loss = loss + dice * weight[i]
    return loss / n_classes


if __name__ == "__main__":
    key = jax.random.PRNGKey(0)
    k1, k2, k3, k4 = jax.random.split(key, 4)

    # --- Test 1: spec shape, raw logits + fused softmax ------------------------------
    N, C, H, W = 2, 4, 16, 16
    logits = jax.random.normal(k1, (N, C, H, W), dtype=jnp.float32)
    target = jax.random.randint(k2, (N, H, W), 0, C, dtype=jnp.int32)

    loss = jax.block_until_ready(dice_loss(logits, target, C, softmax=True))
    ref = jax.block_until_ready(_dice_loss_ref(logits, target, C, softmax=True))
    assert jnp.allclose(loss, ref, rtol=2e-3, atol=1e-4), (loss, ref)

    # --- Test 2: pre-softmaxed probabilities + explicit class weights -----------------
    probs = jax.nn.softmax(logits, axis=1)
    wts = [1.0, 2.0, 0.5, 1.5]
    loss2 = jax.block_until_ready(
        dice_loss(probs, target, C, weight=wts, softmax=False))
    ref2 = jax.block_until_ready(
        _dice_loss_ref(probs, target, C, weight=wts, softmax=False))
    assert jnp.allclose(loss2, ref2, rtol=1e-5, atol=1e-6), (loss2, ref2)

    # --- Test 3: bf16 logits, N=1 (exercises the pixel-axis core split + fori path) ---
    N3, H3, W3 = 1, 128, 128
    logits3 = jax.random.normal(k3, (N3, C, H3, W3), dtype=jnp.bfloat16)
    target3 = jax.random.randint(k4, (N3, H3, W3), 0, C, dtype=jnp.int32)
    loss3 = jax.block_until_ready(
        dice_loss(logits3, target3, C, softmax=True, max_tile_rows=64))
    ref3 = jax.block_until_ready(
        _dice_loss_ref(logits3.astype(jnp.float32), target3, C, softmax=True))
    assert jnp.allclose(loss3, ref3, rtol=3e-3, atol=1e-4), (loss3, ref3)

    # --- Test 4: multi-step pixel accumulation + static leftover-chunk path -----------
    loss4 = jax.block_until_ready(
        dice_loss(logits3.astype(jnp.float32), target3, C, softmax=True,
                  max_tile_rows=16))
    assert jnp.allclose(loss4, ref3, rtol=2e-3, atol=1e-4), (loss4, ref3)

    print("KERNEL_OK")
</pallas_src>

<mosaic_0001>
module attributes {stable_mosaic.version = 11 : i64} {
  func.func @_dice_partials_kernel(%arg0: i32, %arg1: i32, %arg2: i32, %arg3: memref<1x4x2x128xf32, #tpu.memory_space<vmem>>, %arg4: memref<1x1x2x128xi32, #tpu.memory_space<vmem>>, %arg5: memref<1x3x4x8x128xf32, #tpu.memory_space<vmem>>) attributes {dimension_semantics = [#tpu.dimension_semantics<parallel>, #tpu.dimension_semantics<parallel>, #tpu.dimension_semantics<arbitrary>], iteration_bounds = array<i64: 1, 2, 1>, scalar_prefetch = 0 : i64, scratch_operands = 0 : i64, tpu.core_type = #tpu.core_type<tc>, window_params = [{transform_indices = @transform_0, window_bounds = array<i64: 1, 4, 2, 128>}, {transform_indices = @transform_1, window_bounds = array<i64: 1, 1, 2, 128>}, {transform_indices = @transform_2, window_bounds = array<i64: 1, 3, 4, 8, 128>}]} {
    %c0_i32 = arith.constant 0 : i32
    %0 = arith.cmpi eq, %arg2, %c0_i32 : i32
    %1 = arith.extui %0 : i1 to i32
    %c0_i32_0 = arith.constant 0 : i32
    %2 = arith.cmpi ne, %1, %c0_i32_0 : i32
    scf.if %2 {
      %cst_37 = arith.constant 0.000000e+00 : f32
      %43 = vector.broadcast %cst_37 : f32 to vector<1x3x4x8x128xf32>
      %c0_38 = arith.constant 0 : index
      %c0_39 = arith.constant 0 : index
      %c0_40 = arith.constant 0 : index
      %c0_41 = arith.constant 0 : index
      %c0_42 = arith.constant 0 : index
      %44 = vector.load %arg5[%c0_38, %c0_39, %c0_40, %c0_41, %c0_42] : memref<1x3x4x8x128xf32, #tpu.memory_space<vmem>>, vector<1x3x4x8x128xf32>
      tpu.vector_store %arg5[%c0_38, %c0_39, %c0_40, %c0_41, %c0_42], %43 {strides = array<i32>} : memref<1x3x4x8x128xf32, #tpu.memory_space<vmem>>, vector<1x3x4x8x128xf32>,
    } else {
    }
    %c0 = arith.constant 0 : index
    %c0_1 = arith.constant 0 : index
    %c0_2 = arith.constant 0 : index
    %c0_3 = arith.constant 0 : index
    %3 = vector.load %arg3[%c0, %c0_1, %c0_2, %c0_3] : memref<1x4x2x128xf32, #tpu.memory_space<vmem>>, vector<1x4x2x128xf32>
    %4 = vector.shape_cast %3 : vector<1x4x2x128xf32> to vector<4x2x128xf32>
    %c0_4 = arith.constant 0 : index
    %c0_5 = arith.constant 0 : index
    %c0_6 = arith.constant 0 : index
    %c0_7 = arith.constant 0 : index
    %5 = vector.load %arg4[%c0_4, %c0_5, %c0_6, %c0_7] : memref<1x1x2x128xi32, #tpu.memory_space<vmem>>, vector<1x1x2x128xi32>
    %6 = vector.shape_cast %5 : vector<1x1x2x128xi32> to vector<2x128xi32>
    %7 = tpu.iota {dimensions = array<i32: 0>} : vector<4x2x128xi32>
    %cst = arith.constant dense<0xFF800000> : vector<2x128xf32>
    %8 = vector.multi_reduction <maximumf>, %4, %cst [0] : vector<4x2x128xf32> to vector<2x128xf32>
    %9 = vector.shape_cast %8 : vector<2x128xf32> to vector<1x2x128xf32>
    %10 = vector.broadcast %9 : vector<1x2x128xf32> to vector<4x2x128xf32>
    %11 = arith.subf %4, %10 : vector<4x2x128xf32>
    %12 = math.exp %11 : vector<4x2x128xf32>
    %cst_8 = arith.constant dense<0.000000e+00> : vector<2x128xf32>
    %13 = vector.multi_reduction <add>, %12, %cst_8 [0] : vector<4x2x128xf32> to vector<2x128xf32>
    %14 = vector.shape_cast %13 : vector<2x128xf32> to vector<1x2x128xf32>
    %15 = tpu.reciprocal %14 {approx = true} : vector<1x2x128xf32> -> vector<1x2x128xf32>
    %16 = vector.broadcast %15 : vector<1x2x128xf32> to vector<4x2x128xf32>
    %17 = arith.mulf %12, %16 : vector<4x2x128xf32>
    %18 = vector.shape_cast %6 : vector<2x128xi32> to vector<1x2x128xi32>
    %19 = vector.broadcast %18 : vector<1x2x128xi32> to vector<4x2x128xi32>
    %20 = arith.cmpi eq, %7, %19 : vector<4x2x128xi32>
    %21 = arith.extui %20 : vector<4x2x128xi1> to vector<4x2x128xi32>
    %22 = arith.sitofp %21 : vector<4x2x128xi32> to vector<4x2x128xf32>
    %23 = arith.mulf %17, %22 : vector<4x2x128xf32>
    %24 = arith.mulf %17, %17 : vector<4x2x128xf32>
    %c0_9 = arith.constant 0 : index
    %c0_10 = arith.constant 0 : index
    %c0_11 = arith.constant 0 : index
    %c0_12 = arith.constant 0 : index
    %c0_13 = arith.constant 0 : index
    %25 = vector.load %arg5[%c0_9, %c0_10, %c0_11, %c0_12, %c0_13] : memref<1x3x4x8x128xf32, #tpu.memory_space<vmem>>, vector<1x1x4x2x128xf32>
    %26 = vector.shape_cast %25 : vector<1x1x4x2x128xf32> to vector<4x2x128xf32>
    %27 = arith.addf %26, %23 : vector<4x2x128xf32>
    %c0_14 = arith.constant 0 : index
    %c0_15 = arith.constant 0 : index
    %c0_16 = arith.constant 0 : index
    %c0_17 = arith.constant 0 : index
    %c0_18 = arith.constant 0 : index
    %28 = vector.load %arg5[%c0_14, %c0_15, %c0_16, %c0_17, %c0_18] : memref<1x3x4x8x128xf32, #tpu.memory_space<vmem>>, vector<1x1x4x2x128xf32>
    %29 = vector.shape_cast %28 : vector<1x1x4x2x128xf32> to vector<4x2x128xf32>
    %30 = vector.shape_cast %27 : vector<4x2x128xf32> to vector<1x1x4x2x128xf32>
    tpu.vector_store %arg5[%c0_14, %c0_15, %c0_16, %c0_17, %c0_18], %30 {strides = array<i32>} : memref<1x3x4x8x128xf32, #tpu.memory_space<vmem>>, vector<1x1x4x2x128xf32>,
    %c0_19 = arith.constant 0 : index
    %c1 = arith.constant 1 : index
    %c0_20 = arith.constant 0 : index
    %c0_21 = arith.constant 0 : index
    %c0_22 = arith.constant 0 : index
    %31 = vector.load %arg5[%c0_19, %c1, %c0_20, %c0_21, %c0_22] : memref<1x3x4x8x128xf32, #tpu.memory_space<vmem>>, vector<1x1x4x2x128xf32>
    %32 = vector.shape_cast %31 : vector<1x1x4x2x128xf32> to vector<4x2x128xf32>
    %33 = arith.addf %32, %24 : vector<4x2x128xf32>
    %c0_23 = arith.constant 0 : index
    %c1_24 = arith.constant 1 : index
    %c0_25 = arith.constant 0 : index
    %c0_26 = arith.constant 0 : index
    %c0_27 = arith.constant 0 : index
    %34 = vector.load %arg5[%c0_23, %c1_24, %c0_25, %c0_26, %c0_27] : memref<1x3x4x8x128xf32, #tpu.memory_space<vmem>>, vector<1x1x4x2x128xf32>
    %35 = vector.shape_cast %34 : vector<1x1x4x2x128xf32> to vector<4x2x128xf32>
    %36 = vector.shape_cast %33 : vector<4x2x128xf32> to vector<1x1x4x2x128xf32>
    tpu.vector_store %arg5[%c0_23, %c1_24, %c0_25, %c0_26, %c0_27], %36 {strides = array<i32>} : memref<1x3x4x8x128xf32, #tpu.memory_space<vmem>>, vector<1x1x4x2x128xf32>,
    %c0_28 = arith.constant 0 : index
    %c2 = arith.constant 2 : index
    %c0_29 = arith.constant 0 : index
    %c0_30 = arith.constant 0 : index
    %c0_31 = arith.constant 0 : index
    %37 = vector.load %arg5[%c0_28, %c2, %c0_29, %c0_30, %c0_31] : memref<1x3x4x8x128xf32, #tpu.memory_space<vmem>>, vector<1x1x4x2x128xf32>
    %38 = vector.shape_cast %37 : vector<1x1x4x2x128xf32> to vector<4x2x128xf32>
    %39 = arith.addf %38, %22 : vector<4x2x128xf32>
    %c0_32 = arith.constant 0 : index
    %c2_33 = arith.constant 2 : index
    %c0_34 = arith.constant 0 : index
    %c0_35 = arith.constant 0 : index
    %c0_36 = arith.constant 0 : index
    %40 = vector.load %arg5[%c0_32, %c2_33, %c0_34, %c0_35, %c0_36] : memref<1x3x4x8x128xf32, #tpu.memory_space<vmem>>, vector<1x1x4x2x128xf32>
    %41 = vector.shape_cast %40 : vector<1x1x4x2x128xf32> to vector<4x2x128xf32>
    %42 = vector.shape_cast %39 : vector<4x2x128xf32> to vector<1x1x4x2x128xf32>
    tpu.vector_store %arg5[%c0_32, %c2_33, %c0_34, %c0_35, %c0_36], %42 {strides = array<i32>} : memref<1x3x4x8x128xf32, #tpu.memory_space<vmem>>, vector<1x1x4x2x128xf32>,
    return
  }
  func.func @transform_0(%arg0: i32, %arg1: i32, %arg2: i32) -> (i32, i32, i32, i32) {
    %c1_i32 = arith.constant 1 : i32
    %0 = arith.muli %arg0, %c1_i32 : i32
    %1 = arith.addi %0, %arg2 : i32
    %c0_i32 = arith.constant 0 : i32
    %c0_i32_0 = arith.constant 0 : i32
    %c0_i32_1 = arith.constant 0 : i32
    return %arg1, %c0_i32, %1, %c0_i32_0 : i32, i32, i32, i32
  }
  func.func @transform_1(%arg0: i32, %arg1: i32, %arg2: i32) -> (i32, i32, i32, i32) {
    %c1_i32 = arith.constant 1 : i32
    %0 = arith.muli %arg0, %c1_i32 : i32
    %1 = arith.addi %0, %arg2 : i32
    %c0_i32 = arith.constant 0 : i32
    %c0_i32_0 = arith.constant 0 : i32
    %c0_i32_1 = arith.constant 0 : i32
    return %arg1, %c0_i32, %1, %c0_i32_0 : i32, i32, i32, i32
  }
  func.func @transform_2(%arg0: i32, %arg1: i32, %arg2: i32) -> (i32, i32, i32, i32, i32) {
    %c2_i32 = arith.constant 2 : i32
    %0 = arith.muli %arg0, %c2_i32 : i32
    %1 = arith.addi %0, %arg1 : i32
    %c0_i32 = arith.constant 0 : i32
    %c0_i32_0 = arith.constant 0 : i32
    %c0_i32_1 = arith.constant 0 : i32
    %c0_i32_2 = arith.constant 0 : i32
    %c0_i32_3 = arith.constant 0 : i32
    return %1, %c0_i32, %c0_i32_0, %c0_i32_1, %c0_i32_2 : i32, i32, i32, i32, i32
  }
}

</mosaic_0001>

<bundles_post_ra>
// kernel: tpu_custom_call.1
= control target key start
LH: loop header
LB: loop body
LE: loop exit
PB: predicated region body
PF: predicated region fallthrough
CT: control target
= control target key end

     0   :  { %7 = vsyncpa [#allocation3], 0  ;;  %s1035_s0 = inlined_call_operand.hbm [shape: f32[2,4,2,128], index: 0, kind: input, shape index: {}]   ;;  %s1036_s1 = inlined_call_operand.hbm [shape: s32[2,1,2,128], index: 1, kind: input, shape index: {}]   ;;  %s1037_s2 = inlined_call_operand.hbm [shape: f32[2,3,4,8,128], index: 2, kind: output, shape index: {}]  }
   0x1   :  { %9 = vsyncpa [#allocation3 + $0x1], 0 }
   0x2   :  { %10 = vsyncpa [#allocation6], 0 }
   0x3   :  { %12 = vsyncpa [#allocation6 + $0x1], 0 }
   0x4   :  { %13 = vsyncpa [#allocation4], 0 }
   0x5   :  { %15 = vsyncpa [#allocation4 + $0x1], 0  ;;  %s770_s9 = smov 0   ;;  %s772_s10 = smov 0  }
   0x6   :  { %s774_s11 = smov 0   ;;  %s776_s12 = smov 0  }
   0x7   :  { %s778_s13 = smov 0   ;;  %s780_s14 = smov 0  }
   0x8 LB: > { %s479_s15 = sadd.s32 4294967295, %s745_s14   ;;  %s480_s16 = sadd.s32 4294967294, %s745_s14   ;;  %s745_s14 = sphi %s780_s14, %s21_s14   ;;  %s741_s13 = sphi %s778_s13, %s1056_s13   ;;  %s737_s12 = sphi %s776_s12, %s1055_s12   ;;  %s733_s11 = sphi %s774_s11, %s1054_s11   ;;  %s729_s10 = sphi %s772_s10, %s1053_s10   ;;  %s725_s9 = sphi %s770_s9, %s1052_s9  }
   0x9   : > { %s36_s17 = sadd.s32 1, %s741_s13  ;;  %s51_s18 = sadd.s32 1, %s733_s11 }
   0xa   : > { %p38_p0 = scmp.ge.s32.totalorder %s36_s17, 2  ;;  %p58_p1 = scmp.ne.s32.totalorder %s733_s11, %s729_s10 }
   0xb   : > { %p59_p2 = scmp.eq.s32.totalorder %s745_s14, 0  ;;  %p64_p3 = scmp.ne.s32.totalorder %s729_s10, %s725_s9 }
   0xc   : > { %s1058_s17 = smov (%p38_p0, %s36_s17), 0  ;;  %p65_p5 = scmp.eq.s32.totalorder %s479_s15, 0 }
   0xd   : > { %p811_p4 = por %p59_p2, %p58_p1  ;;  %s46_s20 = ssub.s32 %s741_s13, %s1058_s17 }
   0xe   : > { %p122_p6 = scmp.eq.s32.totalorder %s479_s15, 1  ;;  %p49_p7 = scmp.eq.s32.totalorder %s46_s20, 0 }
   0xf   : > { %p817_p8 = por %p65_p5, %p64_p3  ;;  %p128_p10 = scmp.eq.s32.totalorder %s480_s16, 1 }
  0x10   : > { %p821_p9 = por %p122_p6, %p58_p1  ;;  %p534_p13 = scmp.lt.s32.totalorder %s745_s14, 2 }
  0x11   : > { %s1041_s21 = scalar_select %p817_p8, 1, 0 }
  0x12   : > { %s1042_s22 = scalar_select %p821_p9, 1, 0 }
  0x13   : > { %s826_s23 = scalar_select %p49_p7, %s733_s11, %s51_s18  }
  0x14   : > { %p828_p11 = por %p128_p10, %p64_p3  ;;  %s835_s25 = sand.u32 1, %s733_s11  }
  0x15   : > { %s483_s26 = sshll.u32 %s835_s25, 3  ;;  %s514_s27 = sshll.u32 %s741_s13, 7 }
  0x16   : > { %s1043_s24 = scalar_select %p828_p11, 1, 0 }
  0x17   : > { %s842_s30 = scalar_lea.hbm %s1035_s0, %s514_s27  ;;  %s152_s3 = scalar_lea.vmem [#allocation2], %s483_s26 }
  0x18   : > { %s161_s4 = sshll.u32 %s152_s3, 4  ;;  %p848_p0 = pnand %p534_p13, %p811_p4  ;;  %s844_s4 = int_to_ptr.vmem [resolvable:$true] %s161_s4 }
  0x19   : > { %s149_s6 = scalar_lea.sflag [#allocation3], %s835_s25  ;;  %s599_s7 = scalar_lea.hbm %s842_s30, 128 }
  0x1a   : > { %p600_p2 = scmp.ne.s32.totalorder %s842_s30, %s599_s7  ;;  %p601_p3 = pneg %p848_p0 }
  0x1b   : > { %s604_s16 = scalar_lea.hbm %s1035_s0, 256  ;;  %p605_p4 = scmp.lt.u32.totalorder %s842_s30, %s1035_s0 }
  0x1c   : > { %p602_p5 = pnand %p601_p3, %p600_p2  ;;  %p606_p7 = scmp.lt.u32.totalorder %s604_s16, %s599_s7 }
  0x1d   : > { %p608_p13 = scmp.lt.u32.totalorder %s599_s7, %s842_s30 }
  0x1e   : > { %p603_p6 = pneg %p602_p5  ;;  %p607_p10 = por %p606_p7, %p605_p4 }
  0x20   : > { %p609_p12 = por %p608_p13, %p607_p10 }
  0x22   : > { %p610_p1 = pnand %p609_p12, %p603_p6 }
  0x24   : > { %613 = shalt.err (!%p610_p1)
}
  0x25   : > { %s614_s20 = scalar_lea.vmem %s844_s4, 128  ;;  %s747_s26 = smov [#allocation2]  }
  0x26   : > { %p615_p2 = scmp.ne.s32.totalorder %s844_s4, %s614_s20  ;;  %s619_s27 = sshll.u32 %s747_s26, 4  ;;  %s620_s27 = int_to_ptr.vmem [resolvable:$false] %s619_s27 }
  0x27   : > { %s621_s28 = scalar_lea.vmem %s620_s27, 256  ;;  %p622_p9 = scmp.lt.s32.totalorder %s844_s4, %s620_s27 }
  0x28   : > { %p617_p5 = pnand %p615_p2, %p601_p3  ;;  %p623_p4 = scmp.lt.s32.totalorder %s621_s28, %s614_s20 }
  0x2a   : > { %p618_p11 = pneg %p617_p5  ;;  %p624_p7 = por %p623_p4, %p622_p9 }
  0x2c   : > { %p625_p10 = pnand %p624_p7, %p618_p11 }
  0x2e   : > { %628 = shalt.err (!%p625_p10)
}
  0x2f   : > { %s748_s29 = smov 32   ;;  %s749_s3 = smov 2  }
  0x30   : > { %526 = dma.hbm_to_vmem [thread:$0]  (!%p848_p0), %s842_s30, 128, %s844_s4, %s149_s6, %s748_s29, %s748_s29, %s749_s3  }
  0x31   : > { %p189_p12 = scmp.lt.s32.totalorder %s745_s14, 3  ;;  %s486_s7 = sshll.u32 %s835_s25, 1 }
  0x32   : > { %s487_s8 = sshll.u32 %s741_s13, 5  ;;  %p1045_p9 = scmp.ge.s32.totalorder %s745_s14, 1 }
  0x33   : > { %s893_s19 = scalar_lea.hbm %s1036_s1, %s487_s8  ;;  %s175_s20 = scalar_lea.vmem [#allocation5], %s486_s7 }
  0x34   : > { %p886_p11 = pnand %p1045_p9, %p189_p12  ;;  %s184_s26 = sshll.u32 %s175_s20, 4  ;;  %s185_s26 = int_to_ptr.vmem [resolvable:$true] %s184_s26 }
  0x35   : > { %s172_s30 = scalar_lea.sflag [#allocation6], %s835_s25  ;;  %s629_s4 = scalar_lea.hbm %s893_s19, 32 }
  0x36   : > { %s1046_s15 = scalar_select %p886_p11, 1, 0 }
  0x37   : > { %p630_p1 = scmp.ne.s32.totalorder %s893_s19, %s629_s4  ;;  %s634_s28 = scalar_lea.hbm %s1036_s1, 64 }
  0x38   : > { %p635_p2 = scmp.lt.u32.totalorder %s893_s19, %s1036_s1  ;;  %p636_p5 = scmp.lt.u32.totalorder %s634_s28, %s629_s4 }
  0x39   : > { %p632_p6 = pnand %p630_p1, %p601_p3  ;;  %p638_p7 = scmp.lt.u32.totalorder %s629_s4, %s893_s19 }
  0x3a   : > { %p637_p4 = por %p636_p5, %p635_p2 }
  0x3b   : > { %p633_p13 = pneg %p632_p6 }
  0x3c   : > { %p639_p10 = por %p638_p7, %p637_p4 }
  0x3e   : > { %p640_p12 = pnand %p639_p10, %p633_p13 }
  0x40   : > { %643 = shalt.err (!%p640_p12)
}
  0x41   : > { %s644_s25 = scalar_lea.vmem %s185_s26, 32  ;;  %s750_s7 = smov [#allocation5]  }
  0x42   : > { %p645_p9 = scmp.ne.s32.totalorder %s185_s26, %s644_s25  ;;  %s649_s8 = sshll.u32 %s750_s7, 4  ;;  %s650_s8 = int_to_ptr.vmem [resolvable:$false] %s649_s8 }
  0x43   : > { %s651_s16 = scalar_lea.vmem %s650_s8, 64  ;;  %p652_p8 = scmp.lt.s32.totalorder %s185_s26, %s650_s8 }
  0x44   : > { %p647_p1 = pnand %p645_p9, %p601_p3  ;;  %p653_p11 = scmp.lt.s32.totalorder %s651_s16, %s644_s25 }
  0x46   : > { %p648_p6 = pneg %p647_p1  ;;  %p654_p2 = por %p653_p11, %p652_p8 }
  0x48   : > { %p655_p5 = pnand %p654_p2, %p648_p6 }
  0x4a   : > { %658 = shalt.err (!%p655_p5)
}
  0x4b   : > { %529 = dma.hbm_to_vmem [thread:$0]  (!%p848_p0), %s893_s19, 32, %s185_s26, %s172_s30  }
  0x4c   : > { %p1047_p13 = scmp.ne.s32.totalorder %s1046_s15, 0 }
  0x4d   : > { %s918_s18 = sand.u32 (!%p1047_p13), 1, %s729_s10   ;;  %p1048_p3 = scmp.ne.s32.totalorder (!%p1047_p13), %s1041_s21, 0 }
  0x4e   : > { %193 = sbr.rel (%p1047_p13) target bundleno = 155 (0x9b), region = 28  ;;  %s489_s20 = sshll.u32 (!%p1047_p13), %s918_s18, 3 }
  0x4f   : > { %s196_s4 = scalar_lea.sflag (!%p1047_p13), [#allocation3], %s918_s18  ;;  %s199_s6 = scalar_lea.vmem (!%p1047_p13), [#allocation2], %s489_s20 }
  0x55   : > { %712 = dma.done.wait (%p1048_p3), %s196_s4, 128  }
  0x56   : > { %714 = vsyncadd (%p1048_p3), %s196_s4, 4294967168  ;;  %s490_s5 = sshll.u32 %s918_s18, 1  ;;  %s205_s15 = scalar_lea.sflag [#allocation6], %s918_s18 }
  0x57   : > { %s208_s19 = scalar_lea.vmem [#allocation5], %s490_s5 }
  0x58   : > { %716 = dma.done.wait (%p1048_p3), %s205_s15, 32  }
  0x59   : > { %718 = vsyncadd (%p1048_p3), %s205_s15, 4294967264  ;;  %s515_s26 = smul.u32 96, %s918_s18  ;;  %v751_v0 = vmov 0.0   ;;  %vm259_vm0 = vcmask 1041408   ;;  %v254_v1 = vld [vmem:[%s199_s6] sm:$0x3] }
  0x5a   : > { %v255_v2 = vld [vmem:[%s199_s6 + $0x2] sm:$0x3]  ;;  %v256_v3 = vld [vmem:[%s199_s6 + $0x4] sm:$0x3]  ;;  %v257_v4 = vld [vmem:[%s199_s6 + $0x6] sm:$0x3] }
  0x5b   : > { %s933_s30 = scalar_lea.vmem [#allocation7], %s515_s26  ;;  %v258_v5 = vld [vmem:[%s208_s19] sm:$0x3]  ;;  %v260_v6 = vsel %vm259_vm0, %v254_v1, -inf  ;;  %v261_v7 = vsel %vm259_vm0, %v255_v2, -inf  ;;  %v262_v8 = vsel %vm259_vm0, %v256_v3, -inf }
  0x5c   : > { %242 = vst [vmem:[%s933_s30] sm:$0xff] %v751_v0  ;;  %243 = vst [vmem:[%s933_s30 + $0x8] sm:$0xff] %v751_v0  ;;  %v263_v9 = vsel %vm259_vm0, %v257_v4, -inf  ;;  %v264_v10 = vmax.f32 %v260_v6, %v261_v7  ;;  %vm291_vm1 = vcmp.eq.s32.totalorder %v258_v5, 0  ;;  %vm292_vm2 = vcmp.eq.s32.totalorder %v258_v5, 1  ;;  %s516_s21 = smul.u32 1536, %s737_s12  ;;  %s365_s27 = sshll.u32 %s933_s30, 4  ;;  %s978_s27 = int_to_ptr.vmem [resolvable:$true] %s365_s27 }
  0x5d   : > { %244 = vst [vmem:[%s933_s30 + $0x10] sm:$0xff] %v751_v0  ;;  %245 = vst [vmem:[%s933_s30 + $0x18] sm:$0xff] %v751_v0  ;;  %v265_v11 = vmax.f32 %v262_v8, %v263_v9  ;;  %vm293_vm3 = vcmp.eq.s32.totalorder %v258_v5, 2  ;;  %vm294_vm4 = vcmp.eq.s32.totalorder %v258_v5, 3  ;;  %v491_v13 = vsel %vm291_vm1, 1.0, %v751_v0  ;;  %s350_s3 = scalar_lea.sflag [#allocation4], %s918_s18 }
  0x5e   : > { %246 = vst [vmem:[%s933_s30 + $0x20] sm:$0xff] %v751_v0  ;;  %247 = vst [vmem:[%s933_s30 + $0x28] sm:$0xff] %v751_v0  ;;  %v492_v14 = vsel %vm292_vm2, 1.0, %v751_v0  ;;  %v493_v15 = vsel %vm293_vm3, 1.0, %v751_v0  ;;  %v494_v23 = vsel %vm294_vm4, 1.0, %v751_v0  ;;  %s976_s29 = scalar_lea.hbm %s1037_s2, %s516_s21  ;;  %s659_s25 = scalar_lea.vmem %s978_s27, 1536 }
  0x5f   : > { %248 = vst [vmem:[%s933_s30 + $0x30] sm:$0xff] %v751_v0  ;;  %249 = vst [vmem:[%s933_s30 + $0x38] sm:$0xff] %v751_v0  ;;  %v266_v12 = vmax.f32 %v264_v10, %v265_v11  ;;  %p660_p8 = scmp.ne.s32.totalorder %s978_s27, %s659_s25  ;;  %p1049_p0 = scmp.ne.s32.totalorder %s1042_s22, 0 }
  0x60   : > { %250 = vst [vmem:[%s933_s30 + $0x40] sm:$0xff] %v751_v0  ;;  %251 = vst [vmem:[%s933_s30 + $0x48] sm:$0xff] %v751_v0  ;;  %s752_s7 = smov [#allocation7]  }
  0x61   : > { %252 = vst [vmem:[%s933_s30 + $0x50] sm:$0xff] %v751_v0  ;;  %253 = vst [vmem:[%s933_s30 + $0x58] sm:$0xff] %v751_v0  ;;  %v267_v16 = vsub.f32 %v254_v1, %v266_v12  ;;  %v268_v17 = vsub.f32 %v255_v2, %v266_v12  ;;  %v269_v18 = vsub.f32 %v256_v3, %v266_v12  ;;  %p661_p11 = pnand %p660_p8, %p1049_p0  ;;  %s663_s8 = sshll.u32 %s752_s7, 4  ;;  %s664_s8 = int_to_ptr.vmem [resolvable:$false] %s663_s8 }
  0x62   : > { %v270_v19 = vsub.f32 %v257_v4, %v266_v12  ;;  %s665_s16 = scalar_lea.vmem %s664_s8, 3072  ;;  %p666_p7 = scmp.lt.s32.totalorder %s978_s27, %s664_s8 }
  0x63   : > { %v271_v28 = vmul.f32 1.442695, %v267_v16  ;;  %v273_v29 = vmul.f32 1.442695, %v268_v17  ;;  %v275_v30 = vmul.f32 1.442695, %v269_v18  ;;  %p662_p4 = pneg %p661_p11  ;;  %p667_p10 = scmp.lt.s32.totalorder %s665_s16, %s659_s25 }
  0x64   : > { %v277_v32 = vmul.f32 1.442695, %v270_v19  ;;  %v311_v46 = vld [vmem:[%s933_s30] sm:$0x3]  ;;  %v312_v48 = vld [vmem:[%s933_s30 + $0x8] sm:$0x3] }
  0x65   : > { %589 = vpow2.f32 %v271_v28  ;;  %v313_v51 = vld [vmem:[%s933_s30 + $0x10] sm:$0x3]  ;;  %v314_v52 = vld [vmem:[%s933_s30 + $0x18] sm:$0x3]  ;;  %v495_v53 = vld [vmem:[%s933_s30 + $0x20] sm:$0x3]  ;;  %p668_p12 = por %p667_p10, %p666_p7 }
  0x66   : > { %591 = vpow2.f32 %v273_v29  ;;  %v496_v58 = vld [vmem:[%s933_s30 + $0x28] sm:$0x3]  ;;  %v497_v59 = vld [vmem:[%s933_s30 + $0x30] sm:$0x3]  ;;  %v498_v60 = vld [vmem:[%s933_s30 + $0x38] sm:$0x3] }
  0x67   : > { %v503_v20 = vld [vmem:[%s933_s30 + $0x40] sm:$0x3]  ;;  %v504_v21 = vld [vmem:[%s933_s30 + $0x48] sm:$0x3]  ;;  %593 = vpow2.f32 %v275_v30  ;;  %p669_p9 = pnand %p668_p12, %p662_p4 }
  0x68   : > { %v505_v22 = vld [vmem:[%s933_s30 + $0x50] sm:$0x3]  ;;  %v341_v24 = vadd.f32 %v503_v20, %v491_v13  ;;  %v342_v25 = vadd.f32 %v504_v21, %v492_v14  ;;  %v506_v27 = vld [vmem:[%s933_s30 + $0x58] sm:$0x3]  ;;  %595 = vpow2.f32 %v277_v32 }
  0x69   : > { %v343_v26 = vadd.f32 %v505_v22, %v493_v15  ;;  %v344_v31 = vadd.f32 %v506_v27, %v494_v23 }
  0x6a   : > { %507 = vst [vmem:[%s933_s30 + $0x40] sm:$0x3] %v341_v24  ;;  %508 = vst [vmem:[%s933_s30 + $0x48] sm:$0x3] %v342_v25 }
  0x6b   : > { %509 = vst [vmem:[%s933_s30 + $0x50] sm:$0x3] %v343_v26  ;;  %510 = vst [vmem:[%s933_s30 + $0x58] sm:$0x3] %v344_v31 }
  0x6f   : > { %v590_v33 = vpop.eup %589 }
  0x70   : > { %v592_v34 = vpop.eup %591  ;;  %v279_v35 = vsel %vm259_vm0, %v590_v33, 0.0 }
  0x71   : > { %v594_v36 = vpop.eup %593  ;;  %v280_v37 = vsel %vm259_vm0, %v592_v34, 0.0 }
  0x72   : > { %v596_v38 = vpop.eup %595  ;;  %v281_v39 = vadd.f32 %v280_v37, %v279_v35  ;;  %v282_v40 = vsel %vm259_vm0, %v594_v36, 0.0 }
  0x73   : > { %v284_v41 = vsel %vm259_vm0, %v596_v38, 0.0 }
  0x74   : > { %v283_v42 = vadd.f32 %v282_v40, %v281_v39 }
  0x76   : > { %v285_v43 = vadd.f32 %v284_v41, %v283_v42 }
  0x78   : > { %597 = vrcp.f32 %v285_v43 }
  0x82   : > { %v598_v44 = vpop.eup %597 }
  0x83   : > { %v287_v45 = vmul.f32 %v598_v44, %v590_v33  ;;  %v288_v47 = vmul.f32 %v598_v44, %v592_v34  ;;  %v289_v49 = vmul.f32 %v598_v44, %v594_v36  ;;  %v290_v50 = vmul.f32 %v598_v44, %v596_v38 }
  0x85   : > { %v303_v54 = vmul.f32 %v491_v13, %v287_v45  ;;  %v304_v55 = vmul.f32 %v492_v14, %v288_v47  ;;  %v305_v56 = vmul.f32 %v493_v15, %v289_v49  ;;  %v306_v57 = vmul.f32 %v494_v23, %v290_v50 }
  0x86   : > { %v307_v61 = vmul.f32 %v287_v45, %v287_v45  ;;  %v308_v62 = vmul.f32 %v288_v47, %v288_v47  ;;  %v309_v63 = vmul.f32 %v289_v49, %v289_v49  ;;  %v310_v0 = vmul.f32 %v290_v50, %v290_v50 }
  0x87   : > { %v315_v1 = vadd.f32 %v311_v46, %v303_v54  ;;  %v316_v2 = vadd.f32 %v312_v48, %v304_v55  ;;  %v317_v3 = vadd.f32 %v313_v51, %v305_v56  ;;  %v318_v4 = vadd.f32 %v314_v52, %v306_v57 }
  0x88   : > { %v328_v5 = vadd.f32 %v495_v53, %v307_v61  ;;  %v329_v6 = vadd.f32 %v496_v58, %v308_v62  ;;  %v330_v7 = vadd.f32 %v497_v59, %v309_v63  ;;  %v331_v8 = vadd.f32 %v498_v60, %v310_v0 }
  0x89   : > { %319 = vst [vmem:[%s933_s30] sm:$0x3] %v315_v1  ;;  %320 = vst [vmem:[%s933_s30 + $0x8] sm:$0x3] %v316_v2 }
  0x8a   : > { %321 = vst [vmem:[%s933_s30 + $0x10] sm:$0x3] %v317_v3  ;;  %322 = vst [vmem:[%s933_s30 + $0x18] sm:$0x3] %v318_v4 }
  0x8b   : > { %499 = vst [vmem:[%s933_s30 + $0x20] sm:$0x3] %v328_v5  ;;  %500 = vst [vmem:[%s933_s30 + $0x28] sm:$0x3] %v329_v6 }
  0x8c   : > { %501 = vst [vmem:[%s933_s30 + $0x30] sm:$0x3] %v330_v7  ;;  %502 = vst [vmem:[%s933_s30 + $0x38] sm:$0x3] %v331_v8 }
  0x8d   : > { %672 = shalt.err (!%p669_p9)
}
  0x8e   : > { %s673_s20 = scalar_lea.hbm %s976_s29, 1536  ;;  %s677_s5 = scalar_lea.hbm %s1037_s2, 3072 }
  0x8f   : > { %p674_p1 = scmp.ne.s32.totalorder %s976_s29, %s673_s20  ;;  %p678_p5 = scmp.lt.u32.totalorder %s976_s29, %s1037_s2 }
  0x90   : > { %p679_p13 = scmp.lt.u32.totalorder %s677_s5, %s673_s20  ;;  %p681_p8 = scmp.lt.u32.totalorder %s673_s20, %s976_s29 }
  0x91   : > { %p675_p6 = pnand %p674_p1, %p1049_p0 }
  0x92   : > { %p680_p3 = por %p679_p13, %p678_p5 }
  0x93   : > { %p676_p2 = pneg %p675_p6 }
  0x94   : > { %p682_p11 = por %p681_p8, %p680_p3 }
  0x96   : > { %p683_p4 = pnand %p682_p11, %p676_p2 }
  0x98   : > { %686 = shalt.err (!%p683_p4)
}
  0x99   : > { %s753_s26 = smov 128   ;;  %s754_s30 = smov 8  }
  0x9a   : > { %521 = dma.vmem_to_hbm [thread:$0]  (%p1049_p0), %s978_s27, 1536, %s976_s29, %s350_s3, %s753_s26, %s753_s26, %s754_s30  }
  0x9b PF: > { %s380_s21 = sand.u32 1, %s725_s9   ;;  %p1050_p7 = scmp.ne.s32.totalorder %s1043_s24, 0 }
  0x9c   : > { %p1051_p10 = scmp.ge.s32.totalorder %s745_s14, 2  ;;  %s381_s12 = scalar_lea.sflag [#allocation4], %s380_s21 }
  0x9e   : > { %p531_p12 = pnand %p1051_p10, %p1050_p7 }
  0xa0   : > { %720 = dma.done.wait (!%p531_p12), %s381_s12, 1536  }
  0xa1   : > { %722 = vsyncadd (!%p531_p12), %s381_s12, 4294965760  ;;  %s21_s14 = sadd.s32 1, %s745_s14   ;;  %s1052_s9 = smov %s729_s10 }
  0xa2   : > { %p18_p9 = scmp.ge.s32.totalorder %s21_s14, 4   ;;  %s1053_s10 = smov %s733_s11 }
  0xa3   : > { %s1054_s11 = smov %s826_s23  ;;  %s1055_s12 = smov %s741_s13 }
  0xa4   : > { %s1056_s13 = smov %s1058_s17  ;;  %20 = sbr.rel (!%p18_p9) target bundleno = 8 (0x8), region = 92 }
  0xab   :  { %386 = vsyncpa [#allocation3], 1 }
  0xac   :  { %388 = vsyncpa [#allocation3 + $0x1], 1 }
  0xad   :  { %389 = vsyncpa [#allocation6], 1 }
  0xae   :  { %391 = vsyncpa [#allocation6 + $0x1], 1 }
  0xaf   :  { %392 = vsyncpa [#allocation4], 1 }
  0xb0   :  { %394 = vsyncpa [#allocation4 + $0x1], 1 }

</bundles_post_ra>
